<compile_context>
chip_gen: v5e
topology: v5e:2x2
jax: 0.10.0
libtpu: 0.0.40
codegen_flags: <defaults>
</compile_context>

<pallas_src>
import jax
import jax.numpy as jnp
import numpy as np
from jax.experimental import pallas as pl
from jax.experimental.pallas import tpu as pltpu


def patch_embed_kernel(p_ref, w_ref, add_ref, o_ref):
    # p_ref:   (tile_m, K)      bf16  patch rows for this M tile
    # w_ref:   (K, E_pad)       bf16  projection weight (resident, const index)
    # add_ref: (tile_m, E_pad)  f32   conv bias + positional rows (resident;
    #                                 tile_m % N == 0 so every M tile sees the
    #                                 same addend rows)
    # o_ref:   (tile_m, E_pad)  f32
    acc = jnp.dot(p_ref[...], w_ref[...],
                  preferred_element_type=jnp.float32)   # MXU, f32 accumulation
    o_ref[...] = acc + add_ref[...]                     # single f32 epilogue add,
                                                        # lane-dense store


def _choose_tile_m(B, N, M):
    """Rows per M block: c*N with c | B, multiple of 8, prefer >=2 blocks."""
    best = None
    for c in range(1, B + 1):
        if B % c:
            continue
        tm = c * N
        if tm % 8:
            continue
        key = (M // tm >= 2, tm <= 512, tm)   # >=2 blocks, then bounded, then big
        if best is None or key > best[0]:
            best = (key, tm)
    return best[1] if best is not None else M   # full block is always legal


def patch_embedding(x, conv_w, conv_b, cls_token, pos_embedding, patch_size):
    """x: (B, C, H, W) NCHW float32.  Returns (B, (H//P)*(W//P)+1, E) float32."""
    B, C, H, W = x.shape
    P = patch_size
    gh, gw = H // P, W // P
    N = gh * gw
    E = conv_w.shape[0]
    K = C * P * P
    M = B * N
    LANE = 128
    E_pad = pl.cdiv(E, LANE) * LANE

    # TODO(synk): at production ViT sizes, fuse this patch-extraction
    # reshape/transpose into the kernel DMA (grid over (B, gh, gw) with
    # index_maps into x.reshape(B, C, gh, P, gw, P)) to avoid an extra full
    # HBM round-trip of the image before the kernel runs.
    patches = (x.reshape(B, C, gh, P, gw, P)
                 .transpose(0, 2, 4, 1, 3, 5)
                 .reshape(M, K)
                 .astype(jnp.bfloat16))

    # Conv2d(kernel=stride=P) == patches @ W^T + b with W:(E, C, P, P),
    # inner flattening order (c, kh, kw).  Zero-pad E -> E_pad for lane-dense
    # stores; padded lanes are sliced off after the kernel.
    w_mat = conv_w.reshape(E, K).T.astype(jnp.bfloat16)                 # (K, E)
    w_pad = jnp.zeros((K, E_pad), jnp.bfloat16).at[:, :E].set(w_mat)

    # Batch-invariant epilogue addend: bias + pos[1:], padded to E_pad lanes.
    add_patch = jnp.zeros((N, E_pad), jnp.float32).at[:, :E].set(
        pos_embedding[1:].astype(jnp.float32)
        + conv_b.reshape(1, E).astype(jnp.float32))                     # (N, E_pad)

    tile_m = _choose_tile_m(B, N, M)
    add_tile = jnp.tile(add_patch, (tile_m // N, 1))                    # (tile_m, E_pad)
    grid_m = M // tile_m

    out = pl.pallas_call(
        patch_embed_kernel,
        out_shape=jax.ShapeDtypeStruct((M, E_pad), jnp.float32),
        grid=(grid_m,),
        in_specs=[
            pl.BlockSpec((tile_m, K), lambda i: (i, 0)),       # patch rows, tiled over M
            pl.BlockSpec((K, E_pad), lambda i: (0, 0)),        # weight, resident
            pl.BlockSpec((tile_m, E_pad), lambda i: (0, 0)),   # bias+pos, resident
        ],
        out_specs=pl.BlockSpec((tile_m, E_pad), lambda i: (i, 0)),
        compiler_params=pltpu.CompilerParams(
            dimension_semantics=("parallel",)),
    )(patches, w_pad, add_tile)

    proj = out[:, :E].reshape(B, N, E)                         # drop lane padding
    # Batch-invariant cls row: cls_token + pos[0], prepended outside the kernel.
    cls_row = cls_token.reshape(1, 1, E) + pos_embedding[0].reshape(1, 1, E)
    cls_rows = jnp.broadcast_to(cls_row.astype(jnp.float32), (B, 1, E))
    return jnp.concatenate([cls_rows, proj], axis=1)           # (B, N+1, E)


def reference(x, conv_w, conv_b, cls_token, pos_embedding, patch_size):
    """Plain-JAX f32 reference matching the PyTorch forward exactly."""
    B = x.shape[0]
    y = jax.lax.conv_general_dilated(
        x, conv_w, window_strides=(patch_size, patch_size), padding="VALID",
        dimension_numbers=("NCHW", "OIHW", "NCHW"))
    y = y + conv_b.reshape(1, -1, 1, 1)
    B_, E, gh, gw = y.shape
    y = y.reshape(B_, E, gh * gw).transpose(0, 2, 1)           # (B, N, E)
    cls = jnp.broadcast_to(cls_token, (B, 1, E))
    y = jnp.concatenate([cls, y], axis=1)
    return y + pos_embedding[None]


if __name__ == "__main__":
    # Module defaults: img_size=32, patch_size=8, in_channels=3, embed_dim=64.
    img_size, patch_size, in_channels, embed_dim = 32, 8, 3, 64
    B = 2
    N = (img_size // patch_size) ** 2

    key = jax.random.PRNGKey(0)
    k_x, k_w, k_b, k_cls, k_pos = jax.random.split(key, 5)

    x = jax.random.normal(k_x, (B, in_channels, img_size, img_size),
                          dtype=jnp.float32)
    conv_w = jax.random.normal(
        k_w, (embed_dim, in_channels, patch_size, patch_size),
        dtype=jnp.float32) * 0.02
    conv_b = jax.random.normal(k_b, (embed_dim,), dtype=jnp.float32) * 0.02
    cls_token = jax.random.normal(k_cls, (1, 1, embed_dim), dtype=jnp.float32)
    pos_embedding = jax.random.normal(k_pos, (N + 1, embed_dim),
                                      dtype=jnp.float32)

    out = patch_embedding(x, conv_w, conv_b, cls_token, pos_embedding,
                          patch_size)
    out = jax.block_until_ready(out)

    ref = reference(x, conv_w, conv_b, cls_token, pos_embedding, patch_size)
    assert out.shape == (B, N + 1, embed_dim)
    # bf16 matmul operands (f32 accumulation) vs. f32 conv reference.
    np.testing.assert_allclose(np.asarray(out), np.asarray(ref),
                               rtol=2e-2, atol=2e-2)
    print("KERNEL_OK")
</pallas_src>

<mosaic_0001>
module attributes {stable_mosaic.version = 11 : i64} {
  func.func @patch_embed_kernel(%arg0: i32, %arg1: memref<16x192xbf16, #tpu.memory_space<vmem>>, %arg2: memref<192x128xbf16, #tpu.memory_space<vmem>>, %arg3: memref<16x128xf32, #tpu.memory_space<vmem>>, %arg4: memref<16x128xf32, #tpu.memory_space<vmem>>) attributes {dimension_semantics = [#tpu.dimension_semantics<parallel>], iteration_bounds = array<i64: 2>, scalar_prefetch = 0 : i64, scratch_operands = 0 : i64, tpu.core_type = #tpu.core_type<tc>, window_params = [{transform_indices = @transform_0, window_bounds = array<i64: 16, 192>}, {pipeline_mode = #tpu.pipeline_mode<synchronous>, transform_indices = @transform_1, window_bounds = array<i64: 192, 128>}, {pipeline_mode = #tpu.pipeline_mode<synchronous>, transform_indices = @transform_2, window_bounds = array<i64: 16, 128>}, {transform_indices = @transform_3, window_bounds = array<i64: 16, 128>}]} {
    %c0 = arith.constant 0 : index
    %c0_0 = arith.constant 0 : index
    %0 = vector.load %arg1[%c0, %c0_0] : memref<16x192xbf16, #tpu.memory_space<vmem>>, vector<16x192xbf16>
    %c0_1 = arith.constant 0 : index
    %c0_2 = arith.constant 0 : index
    %1 = vector.load %arg2[%c0_1, %c0_2] : memref<192x128xbf16, #tpu.memory_space<vmem>>, vector<192x128xbf16>
    %cst = arith.constant dense<0.000000e+00> : vector<16x128xf32>
    %2 = tpu.matmul %0, %1, %cst {dimension_numbers = #tpu.dot_dimension_numbers<[1], [0], [0], [1], [0, 0, 1, 1], [], []>} : vector<16x192xbf16>, vector<192x128xbf16>, vector<16x128xf32> -> vector<16x128xf32>
    %c0_3 = arith.constant 0 : index
    %c0_4 = arith.constant 0 : index
    %3 = vector.load %arg3[%c0_3, %c0_4] : memref<16x128xf32, #tpu.memory_space<vmem>>, vector<16x128xf32>
    %4 = arith.addf %2, %3 : vector<16x128xf32>
    %c0_5 = arith.constant 0 : index
    %c0_6 = arith.constant 0 : index
    %5 = vector.load %arg4[%c0_5, %c0_6] : memref<16x128xf32, #tpu.memory_space<vmem>>, vector<16x128xf32>
    tpu.vector_store %arg4[%c0_5, %c0_6], %4 {strides = array<i32>} : memref<16x128xf32, #tpu.memory_space<vmem>>, vector<16x128xf32>,
    return
  }
  func.func @transform_0(%arg0: i32) -> (i32, i32) {
    %c0_i32 = arith.constant 0 : i32
    %c0_i32_0 = arith.constant 0 : i32
    return %arg0, %c0_i32 : i32, i32
  }
  func.func @transform_1(%arg0: i32) -> (i32, i32) {
    %c0_i32 = arith.constant 0 : i32
    %c0_i32_0 = arith.constant 0 : i32
    %c0_i32_1 = arith.constant 0 : i32
    return %c0_i32, %c0_i32_0 : i32, i32
  }
  func.func @transform_2(%arg0: i32) -> (i32, i32) {
    %c0_i32 = arith.constant 0 : i32
    %c0_i32_0 = arith.constant 0 : i32
    %c0_i32_1 = arith.constant 0 : i32
    return %c0_i32, %c0_i32_0 : i32, i32
  }
  func.func @transform_3(%arg0: i32) -> (i32, i32) {
    %c0_i32 = arith.constant 0 : i32
    %c0_i32_0 = arith.constant 0 : i32
    return %arg0, %c0_i32 : i32, i32
  }
}

</mosaic_0001>

<bundles_post_ra>
// kernel: tpu_custom_call.1
= control target key start
LH: loop header
LB: loop body
LE: loop exit
PB: predicated region body
PF: predicated region fallthrough
CT: control target
= control target key end

     0   :  { %8 = vsyncpa [#allocation3], 0  ;;  %s992_s0 = inlined_call_operand.hbm [shape: bf16[32,192], index: 0, kind: input, shape index: {}]   ;;  %s993_s1 = inlined_call_operand.hbm [shape: bf16[192,128], index: 1, kind: input, shape index: {}]   ;;  %s994_s2 = inlined_call_operand.hbm [shape: f32[16,128], index: 2, kind: input, shape index: {}]   ;;  %s995_s3 = inlined_call_operand.hbm [shape: f32[32,128], index: 3, kind: output, shape index: {}]  }
   0x1   :  { %10 = vsyncpa [#allocation3 + $0x1], 0 }
   0x2   :  { %11 = vsyncpa [#allocation6], 0 }
   0x3   :  { %12 = vsyncpa [#allocation4], 0 }
   0x4   :  { %14 = vsyncpa [#allocation4 + $0x1], 0  ;;  %s835_s12 = smov 0   ;;  %s837_s13 = smov 0  }
   0x5   :  { %s839_s14 = smov 0   ;;  %s841_s15 = smov 0  }
   0x6 LB: > { %s856_s16 = sadd.s32 4294967295, %s805_s15   ;;  %s479_s17 = sadd.s32 4294967294, %s805_s15   ;;  %s805_s15 = sphi %s841_s15, %s1005_s15   ;;  %s801_s14 = sphi %s839_s14, %s1004_s14   ;;  %s797_s13 = sphi %s837_s13, %s1003_s13   ;;  %s793_s12 = sphi %s835_s12, %s1002_s12  }
   0x7   : > { %p40_p0 = scmp.ne.s32.totalorder %s797_s13, %s793_s12  ;;  %p41_p1 = scmp.eq.s32.totalorder %s856_s16, 0 }
   0x8   : > { %p106_p2 = scmp.eq.s32.totalorder %s856_s16, 1  ;;  %p112_p3 = scmp.eq.s32.totalorder %s479_s17, 1 }
   0x9   : > { %p865_p4 = por %p41_p1, %p40_p0  ;;  %p480_p5 = scmp.ge.s32.totalorder %s805_s15, 1 }
   0xa   : > { %p870_p6 = por %p112_p3, %p40_p0  ;;  %p119_p7 = scmp.lt.s32.totalorder %s805_s15, 3 }
   0xb   : > { %s130_s22 = sshll.u32 %s993_s1, 4  ;;  %s807_s24 = smov [#allocation5]   ;;  %s131_s22 = int_to_ptr.hbm [resolvable:$true] %s130_s22 }
   0xc   : > { %p878_p8 = pnand %p480_p5, %p119_p7  ;;  %s132_s25 = sshll.u32 %s807_s24, 4  ;;  %s133_s25 = int_to_ptr.vmem [resolvable:$true] %s132_s25 }
   0xd   : > { %s144_s28 = sshll.u32 %s994_s2, 4  ;;  %s808_s29 = smov 64   ;;  %s145_s28 = int_to_ptr.hbm [resolvable:$true] %s144_s28 }
   0xe   : > { %p584_p9 = pneg %p878_p8  ;;  %s809_s30 = smov 4  }
   0xf   : > { %s810_s4 = smov [#allocation7]   ;;  %s811_s6 = smov 128  }
  0x10   : > { %p585_p10 = pnand %p584_p9, %p41_p1  ;;  %s146_s5 = sshll.u32 %s810_s4, 4  ;;  %s147_s5 = int_to_ptr.vmem [resolvable:$true] %s146_s5 }
  0x11   : > { %s812_s7 = smov 8   ;;  %s894_s8 = sadd.s32 1, %s805_s15  }
  0x12   : > { %587 = dma.hbm_to_vmem [thread:$0]  (!%p585_p10), %s131_s22, 1536, %s133_s25, [#allocation6], %s808_s29, %s808_s29, %s809_s30  }
  0x13   : > { %590 = dma.hbm_to_vmem [thread:$0]  (!%p585_p10), %s145_s28, 256, %s147_s5, [#allocation6], %s811_s6, %s811_s6, %s812_s7  }
  0x14   : > { %s24_s9 = ssub.s32 %s805_s15, %s894_s8  ;;  %s27_s10 = sadd.s32 1, %s801_s14 }
  0x15   : > { %p25_p12 = scmp.eq.s32.totalorder %s24_s9, 0  ;;  %p34_p13 = scmp.ne.s32.totalorder %s801_s14, %s797_s13 }
  0x16   : > { %p35_p0 = scmp.eq.s32.totalorder %s805_s15, 0  ;;  %p601_p7 = scmp.lt.s32.totalorder %s805_s15, 2 }
  0x17   : > { %s903_s11 = scalar_select %p25_p12, %s801_s14, %s27_s10  }
  0x18   : > { %p36_p3 = por %p35_p0, %p34_p13  ;;  %p907_p5 = por %p106_p2, %p34_p13 }
  0x19   : > { %s160_s20 = sand.u32 1, %s801_s14   ;;  %s556_s22 = sshll.u32 %s805_s15, 4 }
  0x1a   : > { %s484_s21 = sshll.u32 %s160_s20, 4  ;;  %s170_s26 = scalar_lea.hbm %s992_s0, %s556_s22 }
  0x1b   : > { %s164_s27 = scalar_lea.vmem [#allocation2], %s484_s21  ;;  %s171_s29 = sshll.u32 %s170_s26, 4  ;;  %s172_s29 = int_to_ptr.hbm [resolvable:$true] %s171_s29 }
  0x1c   : > { %s173_s28 = sshll.u32 %s164_s27, 4  ;;  %p917_p9 = pnand %p601_p7, %p36_p3  ;;  %s174_s28 = int_to_ptr.vmem [resolvable:$true] %s173_s28 }
  0x1d   : > { %s161_s4 = scalar_lea.sflag [#allocation3], %s160_s20  ;;  %s705_s5 = sshra.s32 %s172_s29, 4  ;;  %s706_s5 = int_to_ptr.hbm [resolvable:$true] %s705_s5 }
  0x1e   : > { %s707_s9 = scalar_lea.hbm %s706_s5, 16  ;;  %p709_p10 = pneg %p917_p9 }
  0x1f   : > { %p708_p2 = scmp.ne.s32.totalorder %s706_s5, %s707_s9  ;;  %s712_s22 = scalar_lea.hbm %s992_s0, 32 }
  0x20   : > { %p713_p0 = scmp.lt.s32.totalorder %s706_s5, %s992_s0  ;;  %p714_p3 = scmp.lt.s32.totalorder %s712_s22, %s707_s9 }
  0x21   : > { %p710_p12 = pnand %p709_p10, %p708_p2 }
  0x22   : > { %p715_p7 = por %p714_p3, %p713_p0 }
  0x23   : > { %p711_p13 = pneg %p710_p12 }
  0x25   : > { %p716_p11 = pnand %p715_p7, %p711_p13 }
  0x27   : > { %719 = shalt.err (!%p716_p11)
}
  0x28   : > { %594 = dma.hbm_to_vmem [thread:$0]  (!%p917_p9), %s172_s29, 256, %s174_s28, %s161_s4, %s811_s6, %s811_s6, %s812_s7  }
  0x29   : > { %185 = sbr.rel (%p878_p8) target bundleno = 223 (0xdf), region = 32  ;;  %s937_s20 = sand.u32 (!%p878_p8), 1, %s797_s13  }
  0x2a   : > { %s489_s26 = sshll.u32 (!%p878_p8), %s937_s20, 4  ;;  %s188_s27 = scalar_lea.sflag (!%p878_p8), [#allocation3], %s937_s20 }
  0x2b   : > { %s943_s5 = scalar_lea.vmem (!%p878_p8), [#allocation2], %s489_s26 }
  0x2e   : > { %780 = dma.done.wait (%p865_p4), %s188_s27, 256  }
  0x2f   : > { %782 = vsyncadd (%p865_p4), %s188_s27, 4294967040 }
  0x30   : > { %784 = dma.done.wait (%p41_p1), [#allocation6], 1792  }
  0x31   : > { %786 = vsyncadd (%p41_p1), [#allocation6], 4294965504  ;;  %v566_v0 = vld [vmem:[#allocation5 + $0x38] sm:$0xff]  ;;  %v565_v2 = vld [vmem:[#allocation5 + $0x30] sm:$0xff]  ;;  %vm337_vm0 = vcmask 523264   ;;  %s571_s18 = sshll.u32 %s856_s16, 4 }
  0x32   : > { %v570_v1 = vld [vmem:[#allocation5 + $0x58] sm:$0xff]  ;;  %341 = vmatpush.bf16.msra.mxu0 %v566_v0  ;;  %v569_v3 = vld [vmem:[#allocation5 + $0x50] sm:$0xff]  ;;  %v564_v4 = vld [vmem:[#allocation5 + $0x28] sm:$0xff]  ;;  %s383_s7 = scalar_lea.hbm %s995_s3, %s571_s18  ;;  %s224_s28 = scalar_lea.vmem [#allocation8], %s489_s26 }
  0x33   : > { %359 = vmatpush.bf16.msra.mxu1 %v570_v1  ;;  %v568_v5 = vld [vmem:[#allocation5 + $0x48] sm:$0xff]  ;;  %v563_v6 = vld [vmem:[#allocation5 + $0x20] sm:$0xff]  ;;  %v562_v10 = vld [vmem:[#allocation5 + $0x18] sm:$0xff]  ;;  %s384_s29 = sshll.u32 %s224_s28, 4  ;;  %s386_s30 = sshll.u32 %s383_s7, 4  ;;  %s385_s29 = int_to_ptr.vmem [resolvable:$true] %s384_s29  ;;  %s387_s30 = int_to_ptr.hbm [resolvable:$true] %s386_s30 }
  0x34   : > { %v567_v7 = vld [vmem:[#allocation5 + $0x40] sm:$0xff]  ;;  %v497_v9 = vld [vmem:[%s943_s5 + $0x8] sm:$0xf0]  ;;  %v561_v12 = vld [vmem:[#allocation5 + $0x10] sm:$0xff]  ;;  %s372_s16 = scalar_lea.sflag [#allocation4], %s937_s20  ;;  %s749_s4 = sshra.s32 %s387_s30, 4  ;;  %s750_s4 = int_to_ptr.hbm [resolvable:$true] %s749_s4 }
  0x35   : > { %v557_v8 = vld [vmem:[%s943_s5 + $0x4] sm:$0xf]  ;;  %v560_v13 = vld [vmem:[#allocation5 + $0x8] sm:$0xff]  ;;  %v495_v15 = vld [vmem:[%s943_s5] sm:$0xf]  ;;  %s751_s9 = scalar_lea.hbm %s750_s4, 16  ;;  %p756_p11 = scmp.lt.s32.totalorder %s750_s4, %s995_s3 }
  0x36   : > { %342 = vmatpush.bf16.msra.mxu0 %v565_v2  ;;  %v500_v11 = vor.u32 %v557_v8, %v497_v9  ;;  %v559_v14 = vld [vmem:[#allocation5] sm:$0xff]  ;;  %v558_v16 = vld [vmem:[%s943_s5 + $0x4] sm:$0xf0]  ;;  %p752_p1 = scmp.ne.s32.totalorder %s750_s4, %s751_s9  ;;  %s755_s22 = scalar_lea.hbm %s995_s3, 32 }
  0x37   : > { %360 = vmatpush.bf16.msra.mxu1 %v569_v3  ;;  %v496_v17 = vor.u32 %v558_v16, %v495_v15  ;;  %v254_v18 = vld [vmem:[#allocation7] sm:$0xff]  ;;  %v255_v23 = vld [vmem:[#allocation7 + $0x8] sm:$0xff]  ;;  %p757_p9 = scmp.lt.s32.totalorder %s755_s22, %s751_s9 }
  0x38   : > { %p753_p4 = pnand %p752_p1, %p907_p5 }
  0x39   : > { %p758_p2 = por %p757_p9, %p756_p11 }
  0x3a   : > { %343 = vmatpush.bf16.msra.mxu0 %v564_v4  ;;  %p754_p8 = pneg %p753_p4 }
  0x3b   : > { %361 = vmatpush.bf16.msra.mxu1 %v568_v5 }
  0x3c   : > { %p759_p10 = pnand %p758_p2, %p754_p8 }
  0x3e   : > { %344 = vmatpush.bf16.msra.mxu0 %v563_v6 }
  0x3f   : > { %362 = vmatpush.bf16.msra.mxu1 %v567_v7 }
  0x42   : > { %345 = vmatpush.bf16.msra.mxu0 %v562_v10  ;;  %549 = vmatmul.msk.bf16.vlgmr.msra.gmra.mxu1 %vm337_vm0, %v500_v11 }
  0x46   : > { %346 = vmatpush.bf16.msra.mxu0 %v561_v12 }
  0x4a   : > { %347 = vmatpush.bf16.msra.mxu0 %v560_v13 }
  0x4e   : > { %348 = vmatpush.bf16.msra.mxu0 %v559_v14 }
  0x51   : > { %349 = vmatmul.bf16.vlgmr.msra.gmra.mxu0 %v496_v17 }
  0xbf   : > { %v364_v19 = vpop.f32.mrf.mxu1 }
  0xc7   : > { %v366_v26 = vpop.f32.mrf.mxu1 }
  0xce   : > { %v350_v20 = vpop.f32.mrf.mxu0 }
  0xcf   : > { %v351_v21 = vadd.f32 %v350_v20, %v254_v18 }
  0xd1   : > { %v365_v22 = vadd.f32 %v364_v19, %v351_v21 }
  0xd3   : > { %369 = vst [vmem:[%s224_s28] sm:$0xff] %v365_v22 }
  0xd6   : > { %v352_v24 = vpop.f32.mrf.mxu0 }
  0xd7   : > { %v353_v25 = vadd.f32 %v352_v24, %v255_v23 }
  0xd9   : > { %v367_v27 = vadd.f32 %v366_v26, %v353_v25 }
  0xdb   : > { %370 = vst [vmem:[%s224_s28 + $0x8] sm:$0xff] %v367_v27 }
  0xdc   : > { %762 = shalt.err (!%p759_p10)
}
  0xdd   : > { %s813_s20 = smov 128   ;;  %s814_s26 = smov 8  }
  0xde   : > { %582 = dma.vmem_to_hbm [thread:$0]  (%p907_p5), %s385_s29, 256, %s387_s30, %s372_s16, %s813_s20, %s813_s20, %s814_s26  }
  0xdf PF: > { %s401_s27 = sand.u32 1, %s793_s12   ;;  %p1001_p12 = scmp.ge.s32.totalorder %s805_s15, 2 }
  0xe0   : > { %s402_s5 = scalar_lea.sflag [#allocation4], %s401_s27 }
  0xe1   : > { %p596_p13 = pnand %p1001_p12, %p870_p6 }
  0xe3   : > { %p597_p0 = pneg %p596_p13 }
  0xe5   : > { %788 = dma.done.wait (%p597_p0), %s402_s5, 256  }
  0xe6   : > { %790 = vsyncadd (%p597_p0), %s402_s5, 4294967040  ;;  %p17_p3 = scmp.ge.s32.totalorder %s894_s8, 4   ;;  %s1002_s12 = smov %s797_s13 }
  0xe7   : > { %s1003_s13 = smov %s801_s14  ;;  %s1004_s14 = smov %s903_s11 }
  0xe8   : > { %s1005_s15 = smov %s894_s8  ;;  %19 = sbr.rel (!%p17_p3) target bundleno = 6 (0x6), region = 85 }
  0xed   :  { %408 = vsyncpa [#allocation3], 1 }
  0xee   :  { %410 = vsyncpa [#allocation3 + $0x1], 1 }
  0xef   :  { %411 = vsyncpa [#allocation6], 1 }
  0xf0   :  { %412 = vsyncpa [#allocation4], 1 }
  0xf1   :  { %414 = vsyncpa [#allocation4 + $0x1], 1 }

</bundles_post_ra>
